<compile_context>
chip_gen: v5e
topology: v5e:2x2
jax: 0.10.0
libtpu: 0.0.40
codegen_flags: <defaults>
</compile_context>

<pallas_src>
import functools

import jax
import jax.numpy as jnp
from jax.experimental import pallas as pl
from jax.experimental.pallas import tpu as pltpu

P_WEIGHT = 1.0
N_WEIGHT = 1.0
TEMPERATURE = 0.1

_LANES = 128
_NCORES = 2            # v7x: 2 TensorCores; on v5e/v6e this is just a size-2 parallel axis.
_DEF_TILE_ROWS = 1024  # 1024x128 f32 = 512 KiB/buffer; ~2.5 MiB total double-buffered.


def _round_up(x, m):
    return -(-x // m) * m


def _wm_detection_kernel(pos_ref, neg_ref, mask_ref, out_ref, acc_ref, *,
                         n_valid, rows_per_core, tile_rows, inv_temp):
    c = pl.program_id(0)          # core-parallel axis
    i = pl.program_id(1)          # reduction axis over row tiles

    @pl.when(i == 0)
    def _():
        acc_ref[...] = jnp.zeros_like(acc_ref)

    x_p = pos_ref[0].astype(jnp.float32) * inv_temp      # (tile_rows, 128)
    x_n = neg_ref[0].astype(jnp.float32) * inv_temp
    m = mask_ref[0].astype(jnp.float32)                  # int8 0/1 -> f32

    # Validity mask for the zero-padded tail (flat element index < n_valid).
    row_ids = jax.lax.broadcasted_iota(jnp.int32, (tile_rows, _LANES), 0)
    lane_ids = jax.lax.broadcasted_iota(jnp.int32, (tile_rows, _LANES), 1)
    flat = (c * rows_per_core + i * tile_rows + row_ids) * _LANES + lane_ids
    valid = flat < n_valid

    # Stable BCE-with-logits: bce(x, z) = base(x) - x*z, base(x) = max(x,0)+log1p(exp(-|x|)).
    base_p = jnp.maximum(x_p, 0.0) + jnp.log1p(jnp.exp(-jnp.abs(x_p)))
    base_n = jnp.maximum(x_n, 0.0) + jnp.log1p(jnp.exp(-jnp.abs(x_n)))
    ne_one = (m != 1.0).astype(jnp.float32)

    def fold(v):
        # (tile_rows,128) -> (8,128): cross-vreg adds only (VALU), no XLU reduce per step.
        return jnp.sum(v.reshape(tile_rows // 8, 8, _LANES), axis=0)

    acc_ref[0] += fold(jnp.where(valid, base_p, 0.0))    # sum base(x_p)
    acc_ref[1] += fold(jnp.where(valid, x_p * m, 0.0))   # sum x_p*mask (== sum x_p if mask all-ones)
    acc_ref[2] += fold(jnp.where(valid, base_n, 0.0))    # sum base(x_n)   (target = 0)
    acc_ref[3] += fold(jnp.where(valid, ne_one, 0.0))    # count(mask != 1)

    @pl.when(i == pl.num_programs(1) - 1)
    def _():
        out_ref[0] = acc_ref[...]


def wm_detection_loss(positive, negative, mask,
                      p_weight=P_WEIGHT, n_weight=N_WEIGHT,
                      temperature=TEMPERATURE, tile_rows=_DEF_TILE_ROWS):
    n = positive.size
    rows = -(-n // _LANES)
    rows_per_core = -(-rows // _NCORES)
    tile_rows = max(32, min(_round_up(tile_rows, 32), _round_up(rows_per_core, 32)))
    rows_per_core = _round_up(rows_per_core, tile_rows)
    steps = rows_per_core // tile_rows
    padded = _NCORES * rows_per_core * _LANES

    def prep(x, dtype=None):
        flat = x.reshape(-1)
        if dtype is not None:
            flat = flat.astype(dtype)
        if padded != n:
            flat = jnp.pad(flat, (0, padded - n))
        return flat.reshape(_NCORES, rows_per_core, _LANES)

    pos3d = prep(positive)                 # native dtype (f32/bf16): no wrapper up-cast
    neg3d = prep(negative)
    mask3d = prep(mask, jnp.int8)          # 1 B/elem in HBM; truncation mirrors torch .to(int)

    kernel = functools.partial(
        _wm_detection_kernel,
        n_valid=n, rows_per_core=rows_per_core, tile_rows=tile_rows,
        inv_temp=float(1.0 / temperature))

    parts = pl.pallas_call(
        kernel,
        out_shape=jax.ShapeDtypeStruct((_NCORES, 4, 8, _LANES), jnp.float32),
        grid_spec=pltpu.PrefetchScalarGridSpec(
            num_scalar_prefetch=0,
            grid=(_NCORES, steps),
            in_specs=[
                pl.BlockSpec((1, tile_rows, _LANES), lambda c, i: (c, i, 0)),
                pl.BlockSpec((1, tile_rows, _LANES), lambda c, i: (c, i, 0)),
                pl.BlockSpec((1, tile_rows, _LANES), lambda c, i: (c, i, 0)),
            ],
            out_specs=pl.BlockSpec((1, 4, 8, _LANES), lambda c, i: (c, 0, 0, 0)),
            scratch_shapes=[pltpu.VMEM((4, 8, _LANES), jnp.float32)],
        ),
        compiler_params=pltpu.CompilerParams(
            dimension_semantics=("parallel", "arbitrary")),
    )(pos3d, neg3d, mask3d)

    sums = jnp.sum(parts, axis=(0, 2, 3))       # tiny (2,4,8,128) -> (4,) reduce in plain XLA
    n_f = jnp.float32(n)                        # BCEWithLogitsLoss(reduction='mean')
    loss_p = p_weight * (sums[0] - sums[1]) / n_f   # BCE(pos/t, mask)  (== BCE(pos/t, 1) if all-ones)
    loss_n = n_weight * sums[2] / n_f               # BCE(neg/t, 0)
    all_ones = sums[3] == 0.0
    return jnp.where(all_ones, loss_p + loss_n, loss_p)


def _ref_loss(positive, negative, mask,
              p_weight=P_WEIGHT, n_weight=N_WEIGHT, temperature=TEMPERATURE):
    # pure-JAX reference mirroring the PyTorch forward
    xp = positive.astype(jnp.float32) / temperature
    xn = negative.astype(jnp.float32) / temperature
    m = mask.astype(jnp.float32)

    def bce_mean(x, z):
        return jnp.mean(jnp.maximum(x, 0.0) - x * z + jnp.log1p(jnp.exp(-jnp.abs(x))))

    loss_p_masked = p_weight * bce_mean(xp, jnp.trunc(m))     # torch: mask.to(int)
    loss_p = p_weight * bce_mean(xp, jnp.ones_like(xp))
    loss_n = n_weight * bce_mean(xn, jnp.zeros_like(xn))
    return jnp.where(jnp.all(mask == 1), loss_p + loss_n, loss_p_masked)


if __name__ == "__main__":
    key = jax.random.PRNGKey(0)
    k1, k2, k3, k4 = jax.random.split(key, 4)

    B, C, T = 2, 4, 16
    positive = jax.random.normal(k1, (B, C, T), dtype=jnp.float32)
    negative = jax.random.normal(k2, (B, C, T), dtype=jnp.float32)

    # Case 1: mask all ones  -> loss_p + loss_n branch
    mask_ones = jnp.ones((B, C, T), dtype=jnp.float32)
    # Case 2: mixed 0/1 mask -> masked-positive-only branch
    mask_mixed = jax.random.bernoulli(k3, p=0.5, shape=(B, C, T)).astype(jnp.float32)

    out1 = jax.block_until_ready(wm_detection_loss(positive, negative, mask_ones))
    out2 = jax.block_until_ready(wm_detection_loss(positive, negative, mask_mixed))
    ref1 = _ref_loss(positive, negative, mask_ones)
    ref2 = _ref_loss(positive, negative, mask_mixed)
    assert jnp.allclose(out1, ref1, atol=1e-5, rtol=1e-5), (out1, ref1)
    assert jnp.allclose(out2, ref2, atol=1e-5, rtol=1e-5), (out2, ref2)

    # Case 3: bf16 logits straight into the kernel (no wrapper up-cast).
    out3 = jax.block_until_ready(
        wm_detection_loss(positive.astype(jnp.bfloat16),
                          negative.astype(jnp.bfloat16), mask_mixed))
    ref3 = _ref_loss(positive.astype(jnp.bfloat16),
                     negative.astype(jnp.bfloat16), mask_mixed)
    assert jnp.allclose(out3, ref3, atol=1e-4, rtol=1e-4), (out3, ref3)

    # Case 4: larger ragged tensor -> exercises multi-step accumulation on both
    # grid "cores" plus the tail-padding validity mask (tile_rows=64 -> 4 steps).
    B2, C2, T2 = 2, 4, 8191
    pos_l = jax.random.normal(k4, (B2, C2, T2), dtype=jnp.float32)
    neg_l = jax.random.normal(k1, (B2, C2, T2), dtype=jnp.float32)
    mask_l = jax.random.bernoulli(k2, p=0.7, shape=(B2, C2, T2)).astype(jnp.float32)
    out4 = jax.block_until_ready(wm_detection_loss(pos_l, neg_l, mask_l, tile_rows=64))
    ref4 = _ref_loss(pos_l, neg_l, mask_l)
    assert jnp.allclose(out4, ref4, atol=1e-4, rtol=1e-4), (out4, ref4)

    print("KERNEL_OK")
</pallas_src>

<mosaic_0001>
module attributes {stable_mosaic.version = 11 : i64} {
  func.func @_wm_detection_kernel(%arg0: i32, %arg1: i32, %arg2: memref<1x32x128xf32, #tpu.memory_space<vmem>>, %arg3: memref<1x32x128xf32, #tpu.memory_space<vmem>>, %arg4: memref<1x32x128xi8, #tpu.memory_space<vmem>>, %arg5: memref<1x4x8x128xf32, #tpu.memory_space<vmem>>, %arg6: memref<4x8x128xf32, #tpu.memory_space<vmem>>) attributes {dimension_semantics = [#tpu.dimension_semantics<parallel>, #tpu.dimension_semantics<arbitrary>], iteration_bounds = array<i64: 2, 1>, scalar_prefetch = 0 : i64, scratch_operands = 1 : i64, tpu.core_type = #tpu.core_type<tc>, window_params = [{transform_indices = @transform_0, window_bounds = array<i64: 1, 32, 128>}, {transform_indices = @transform_1, window_bounds = array<i64: 1, 32, 128>}, {transform_indices = @transform_2, window_bounds = array<i64: 1, 32, 128>}, {transform_indices = @transform_3, window_bounds = array<i64: 1, 4, 8, 128>}]} {
    %c0_i32 = arith.constant 0 : i32
    %0 = arith.cmpi eq, %arg1, %c0_i32 : i32
    %1 = arith.extui %0 : i1 to i32
    %c0_i32_0 = arith.constant 0 : i32
    %2 = arith.cmpi ne, %1, %c0_i32_0 : i32
    scf.if %2 {
      %cst_48 = arith.constant 0.000000e+00 : f32
      %90 = vector.broadcast %cst_48 : f32 to vector<4x8x128xf32>
      %c0_49 = arith.constant 0 : index
      %c0_50 = arith.constant 0 : index
      %c0_51 = arith.constant 0 : index
      %91 = vector.load %arg6[%c0_49, %c0_50, %c0_51] : memref<4x8x128xf32, #tpu.memory_space<vmem>>, vector<4x8x128xf32>
      tpu.vector_store %arg6[%c0_49, %c0_50, %c0_51], %90 {strides = array<i32>} : memref<4x8x128xf32, #tpu.memory_space<vmem>>, vector<4x8x128xf32>,
    } else {
    }
    %c0 = arith.constant 0 : index
    %c0_1 = arith.constant 0 : index
    %c0_2 = arith.constant 0 : index
    %3 = vector.load %arg2[%c0, %c0_1, %c0_2] : memref<1x32x128xf32, #tpu.memory_space<vmem>>, vector<1x32x128xf32>
    %4 = vector.shape_cast %3 : vector<1x32x128xf32> to vector<32x128xf32>
    %cst = arith.constant 1.000000e+01 : f32
    %5 = vector.broadcast %cst : f32 to vector<32x128xf32>
    %6 = arith.mulf %4, %5 : vector<32x128xf32>
    %c0_3 = arith.constant 0 : index
    %c0_4 = arith.constant 0 : index
    %c0_5 = arith.constant 0 : index
    %7 = vector.load %arg3[%c0_3, %c0_4, %c0_5] : memref<1x32x128xf32, #tpu.memory_space<vmem>>, vector<1x32x128xf32>
    %8 = vector.shape_cast %7 : vector<1x32x128xf32> to vector<32x128xf32>
    %cst_6 = arith.constant 1.000000e+01 : f32
    %9 = vector.broadcast %cst_6 : f32 to vector<32x128xf32>
    %10 = arith.mulf %8, %9 : vector<32x128xf32>
    %c0_7 = arith.constant 0 : index
    %c0_8 = arith.constant 0 : index
    %c0_9 = arith.constant 0 : index
    %11 = vector.load %arg4[%c0_7, %c0_8, %c0_9] : memref<1x32x128xi8, #tpu.memory_space<vmem>>, vector<1x32x128xi8>
    %12 = vector.shape_cast %11 : vector<1x32x128xi8> to vector<32x128xi8>
    %13 = arith.sitofp %12 : vector<32x128xi8> to vector<32x128xf32>
    %14 = tpu.iota {dimensions = array<i32: 0>} : vector<32x128xi32>
    %15 = tpu.iota {dimensions = array<i32: 1>} : vector<32x128xi32>
    %c32_i32 = arith.constant 32 : i32
    %16 = arith.muli %arg0, %c32_i32 : i32
    %c32_i32_10 = arith.constant 32 : i32
    %17 = arith.muli %arg1, %c32_i32_10 : i32
    %18 = arith.addi %16, %17 : i32
    %19 = vector.broadcast %18 : i32 to vector<32x128xi32>
    %20 = arith.addi %19, %14 : vector<32x128xi32>
    %c128_i32 = arith.constant 128 : i32
    %21 = vector.broadcast %c128_i32 : i32 to vector<32x128xi32>
    %22 = arith.muli %20, %21 : vector<32x128xi32>
    %23 = arith.addi %22, %15 : vector<32x128xi32>
    %c128_i32_11 = arith.constant 128 : i32
    %24 = vector.broadcast %c128_i32_11 : i32 to vector<32x128xi32>
    %25 = arith.cmpi slt, %23, %24 : vector<32x128xi32>
    %cst_12 = arith.constant 0.000000e+00 : f32
    %26 = vector.broadcast %cst_12 : f32 to vector<32x128xf32>
    %27 = arith.maximumf %6, %26 : vector<32x128xf32>
    %28 = math.absf %6 : vector<32x128xf32>
    %cst_13 = arith.constant 0.000000e+00 : f32
    %29 = vector.broadcast %cst_13 : f32 to vector<32x128xf32>
    %30 = arith.subf %29, %28 : vector<32x128xf32>
    %31 = math.exp %30 : vector<32x128xf32>
    %32 = math.log1p %31 : vector<32x128xf32>
    %33 = arith.addf %27, %32 : vector<32x128xf32>
    %cst_14 = arith.constant 0.000000e+00 : f32
    %34 = vector.broadcast %cst_14 : f32 to vector<32x128xf32>
    %35 = arith.maximumf %10, %34 : vector<32x128xf32>
    %36 = math.absf %10 : vector<32x128xf32>
    %cst_15 = arith.constant 0.000000e+00 : f32
    %37 = vector.broadcast %cst_15 : f32 to vector<32x128xf32>
    %38 = arith.subf %37, %36 : vector<32x128xf32>
    %39 = math.exp %38 : vector<32x128xf32>
    %40 = math.log1p %39 : vector<32x128xf32>
    %41 = arith.addf %35, %40 : vector<32x128xf32>
    %cst_16 = arith.constant 1.000000e+00 : f32
    %42 = vector.broadcast %cst_16 : f32 to vector<32x128xf32>
    %43 = arith.cmpf one, %13, %42 : vector<32x128xf32>
    %44 = arith.extui %43 : vector<32x128xi1> to vector<32x128xi32>
    %45 = arith.sitofp %44 : vector<32x128xi32> to vector<32x128xf32>
    %c0_17 = arith.constant 0 : index
    %c0_18 = arith.constant 0 : index
    %c0_19 = arith.constant 0 : index
    %46 = vector.load %arg6[%c0_17, %c0_18, %c0_19] : memref<4x8x128xf32, #tpu.memory_space<vmem>>, vector<1x8x128xf32>
    %47 = vector.shape_cast %46 : vector<1x8x128xf32> to vector<8x128xf32>
    %cst_20 = arith.constant 0.000000e+00 : f32
    %48 = vector.broadcast %cst_20 : f32 to vector<32x128xf32>
    %49 = arith.select %25, %33, %48 : vector<32x128xi1>, vector<32x128xf32>
    %50 = vector.shape_cast %49 : vector<32x128xf32> to vector<4x8x128xf32>
    %cst_21 = arith.constant dense<0.000000e+00> : vector<8x128xf32>
    %51 = vector.multi_reduction <add>, %50, %cst_21 [0] : vector<4x8x128xf32> to vector<8x128xf32>
    %52 = arith.addf %47, %51 : vector<8x128xf32>
    %c0_22 = arith.constant 0 : index
    %c0_23 = arith.constant 0 : index
    %c0_24 = arith.constant 0 : index
    %53 = vector.load %arg6[%c0_22, %c0_23, %c0_24] : memref<4x8x128xf32, #tpu.memory_space<vmem>>, vector<1x8x128xf32>
    %54 = vector.shape_cast %53 : vector<1x8x128xf32> to vector<8x128xf32>
    %55 = vector.shape_cast %52 : vector<8x128xf32> to vector<1x8x128xf32>
    tpu.vector_store %arg6[%c0_22, %c0_23, %c0_24], %55 {strides = array<i32>} : memref<4x8x128xf32, #tpu.memory_space<vmem>>, vector<1x8x128xf32>,
    %c1 = arith.constant 1 : index
    %c0_25 = arith.constant 0 : index
    %c0_26 = arith.constant 0 : index
    %56 = vector.load %arg6[%c1, %c0_25, %c0_26] : memref<4x8x128xf32, #tpu.memory_space<vmem>>, vector<1x8x128xf32>
    %57 = vector.shape_cast %56 : vector<1x8x128xf32> to vector<8x128xf32>
    %58 = arith.mulf %6, %13 : vector<32x128xf32>
    %cst_27 = arith.constant 0.000000e+00 : f32
    %59 = vector.broadcast %cst_27 : f32 to vector<32x128xf32>
    %60 = arith.select %25, %58, %59 : vector<32x128xi1>, vector<32x128xf32>
    %61 = vector.shape_cast %60 : vector<32x128xf32> to vector<4x8x128xf32>
    %cst_28 = arith.constant dense<0.000000e+00> : vector<8x128xf32>
    %62 = vector.multi_reduction <add>, %61, %cst_28 [0] : vector<4x8x128xf32> to vector<8x128xf32>
    %63 = arith.addf %57, %62 : vector<8x128xf32>
    %c1_29 = arith.constant 1 : index
    %c0_30 = arith.constant 0 : index
    %c0_31 = arith.constant 0 : index
    %64 = vector.load %arg6[%c1_29, %c0_30, %c0_31] : memref<4x8x128xf32, #tpu.memory_space<vmem>>, vector<1x8x128xf32>
    %65 = vector.shape_cast %64 : vector<1x8x128xf32> to vector<8x128xf32>
    %66 = vector.shape_cast %63 : vector<8x128xf32> to vector<1x8x128xf32>
    tpu.vector_store %arg6[%c1_29, %c0_30, %c0_31], %66 {strides = array<i32>} : memref<4x8x128xf32, #tpu.memory_space<vmem>>, vector<1x8x128xf32>,
    %c2 = arith.constant 2 : index
    %c0_32 = arith.constant 0 : index
    %c0_33 = arith.constant 0 : index
    %67 = vector.load %arg6[%c2, %c0_32, %c0_33] : memref<4x8x128xf32, #tpu.memory_space<vmem>>, vector<1x8x128xf32>
    %68 = vector.shape_cast %67 : vector<1x8x128xf32> to vector<8x128xf32>
    %cst_34 = arith.constant 0.000000e+00 : f32
    %69 = vector.broadcast %cst_34 : f32 to vector<32x128xf32>
    %70 = arith.select %25, %41, %69 : vector<32x128xi1>, vector<32x128xf32>
    %71 = vector.shape_cast %70 : vector<32x128xf32> to vector<4x8x128xf32>
    %cst_35 = arith.constant dense<0.000000e+00> : vector<8x128xf32>
    %72 = vector.multi_reduction <add>, %71, %cst_35 [0] : vector<4x8x128xf32> to vector<8x128xf32>
    %73 = arith.addf %68, %72 : vector<8x128xf32>
    %c2_36 = arith.constant 2 : index
    %c0_37 = arith.constant 0 : index
    %c0_38 = arith.constant 0 : index
    %74 = vector.load %arg6[%c2_36, %c0_37, %c0_38] : memref<4x8x128xf32, #tpu.memory_space<vmem>>, vector<1x8x128xf32>
    %75 = vector.shape_cast %74 : vector<1x8x128xf32> to vector<8x128xf32>
    %76 = vector.shape_cast %73 : vector<8x128xf32> to vector<1x8x128xf32>
    tpu.vector_store %arg6[%c2_36, %c0_37, %c0_38], %76 {strides = array<i32>} : memref<4x8x128xf32, #tpu.memory_space<vmem>>, vector<1x8x128xf32>,
    %c3 = arith.constant 3 : index
    %c0_39 = arith.constant 0 : index
    %c0_40 = arith.constant 0 : index
    %77 = vector.load %arg6[%c3, %c0_39, %c0_40] : memref<4x8x128xf32, #tpu.memory_space<vmem>>, vector<1x8x128xf32>
    %78 = vector.shape_cast %77 : vector<1x8x128xf32> to vector<8x128xf32>
    %cst_41 = arith.constant 0.000000e+00 : f32
    %79 = vector.broadcast %cst_41 : f32 to vector<32x128xf32>
    %80 = arith.select %25, %45, %79 : vector<32x128xi1>, vector<32x128xf32>
    %81 = vector.shape_cast %80 : vector<32x128xf32> to vector<4x8x128xf32>
    %cst_42 = arith.constant dense<0.000000e+00> : vector<8x128xf32>
    %82 = vector.multi_reduction <add>, %81, %cst_42 [0] : vector<4x8x128xf32> to vector<8x128xf32>
    %83 = arith.addf %78, %82 : vector<8x128xf32>
    %c3_43 = arith.constant 3 : index
    %c0_44 = arith.constant 0 : index
    %c0_45 = arith.constant 0 : index
    %84 = vector.load %arg6[%c3_43, %c0_44, %c0_45] : memref<4x8x128xf32, #tpu.memory_space<vmem>>, vector<1x8x128xf32>
    %85 = vector.shape_cast %84 : vector<1x8x128xf32> to vector<8x128xf32>
    %86 = vector.shape_cast %83 : vector<8x128xf32> to vector<1x8x128xf32>
    tpu.vector_store %arg6[%c3_43, %c0_44, %c0_45], %86 {strides = array<i32>} : memref<4x8x128xf32, #tpu.memory_space<vmem>>, vector<1x8x128xf32>,
    %c0_i32_46 = arith.constant 0 : i32
    %87 = arith.cmpi eq, %arg1, %c0_i32_46 : i32
    %88 = arith.extui %87 : i1 to i32
    %c0_i32_47 = arith.constant 0 : i32
    %89 = arith.cmpi ne, %88, %c0_i32_47 : i32
    scf.if %89 {
      %c0_48 = arith.constant 0 : index
      %c0_49 = arith.constant 0 : index
      %c0_50 = arith.constant 0 : index
      %90 = vector.load %arg6[%c0_48, %c0_49, %c0_50] : memref<4x8x128xf32, #tpu.memory_space<vmem>>, vector<4x8x128xf32>
      %c0_51 = arith.constant 0 : index
      %c0_52 = arith.constant 0 : index
      %c0_53 = arith.constant 0 : index
      %c0_54 = arith.constant 0 : index
      %91 = vector.load %arg5[%c0_51, %c0_52, %c0_53, %c0_54] : memref<1x4x8x128xf32, #tpu.memory_space<vmem>>, vector<1x4x8x128xf32>
      %92 = vector.shape_cast %91 : vector<1x4x8x128xf32> to vector<4x8x128xf32>
      %93 = vector.shape_cast %90 : vector<4x8x128xf32> to vector<1x4x8x128xf32>
      tpu.vector_store %arg5[%c0_51, %c0_52, %c0_53, %c0_54], %93 {strides = array<i32>} : memref<1x4x8x128xf32, #tpu.memory_space<vmem>>, vector<1x4x8x128xf32>,
    } else {
    }
    return
  }
  func.func @transform_0(%arg0: i32, %arg1: i32) -> (i32, i32, i32) {
    %c0_i32 = arith.constant 0 : i32
    %c0_i32_0 = arith.constant 0 : i32
    return %arg0, %arg1, %c0_i32 : i32, i32, i32
  }
  func.func @transform_1(%arg0: i32, %arg1: i32) -> (i32, i32, i32) {
    %c0_i32 = arith.constant 0 : i32
    %c0_i32_0 = arith.constant 0 : i32
    return %arg0, %arg1, %c0_i32 : i32, i32, i32
  }
  func.func @transform_2(%arg0: i32, %arg1: i32) -> (i32, i32, i32) {
    %c0_i32 = arith.constant 0 : i32
    %c0_i32_0 = arith.constant 0 : i32
    return %arg0, %arg1, %c0_i32 : i32, i32, i32
  }
  func.func @transform_3(%arg0: i32, %arg1: i32) -> (i32, i32, i32, i32) {
    %c0_i32 = arith.constant 0 : i32
    %c0_i32_0 = arith.constant 0 : i32
    %c0_i32_1 = arith.constant 0 : i32
    %c0_i32_2 = arith.constant 0 : i32
    return %arg0, %c0_i32, %c0_i32_0, %c0_i32_1 : i32, i32, i32, i32
  }
}

</mosaic_0001>

<bundles_post_ra>
// kernel: tpu_custom_call.1
= control target key start
LH: loop header
LB: loop body
LE: loop exit
PB: predicated region body
PF: predicated region fallthrough
CT: control target
= control target key end

     0   :  { %s1364_s0 = inlined_call_operand.hbm [shape: f32[2,32,128], index: 0, kind: input, shape index: {}]   ;;  %s1365_s1 = inlined_call_operand.hbm [shape: f32[2,32,128], index: 1, kind: input, shape index: {}]   ;;  %s1366_s2 = inlined_call_operand.hbm [shape: s8[2,32,128], index: 2, kind: input, shape index: {}]   ;;  %s1367_s3 = inlined_call_operand.hbm [shape: f32[2,4,8,128], index: 3, kind: output, shape index: {}]  }
   0x1   :  { %1376 = sst [smem:[#allocation20_spill]] %s1365_s1 }
   0x2   :  { %8 = vsyncpa [#allocation4], 0 }
   0x3   :  { %10 = vsyncpa [#allocation4 + $0x1], 0 }
   0x4   :  { %11 = vsyncpa [#allocation7], 0 }
   0x5   :  { %13 = vsyncpa [#allocation7 + $0x1], 0 }
   0x6   :  { %14 = vsyncpa [#allocation5], 0 }
   0x7   :  { %16 = vsyncpa [#allocation5 + $0x1], 0  ;;  %s1033_s12 = smov 0   ;;  %s1035_s13 = smov 0  }
   0x8   :  { %s1037_s14 = smov 0   ;;  %s1039_s15 = smov 0  }
   0x9   :  { %s1041_s16 = smov 0   ;;  %s1043_s17 = smov 0  }
   0xa LB: > { %1377 = sst [smem:[#allocation13_spill]] %s986_s12  ;;  %s1064_s18 = sadd.s32 4294967295, %s1006_s17   ;;  %s1006_s17 = sphi %s1043_s17, %s22_s17   ;;  %s1002_s16 = sphi %s1041_s16, %s1413_s16   ;;  %s998_s15 = sphi %s1039_s15, %s1412_s15   ;;  %s994_s14 = sphi %s1037_s14, %s1408_s14   ;;  %s990_s13 = sphi %s1035_s13, %s1411_s13   ;;  %s986_s12 = sphi %s1033_s12, %s1410_s12  }
   0xb   : > { %1378 = sst [smem:[#allocation14_spill]] %s994_s14  ;;  %s692_s19 = sadd.s32 4294967294, %s1006_s17  }
   0xc   : > { %1379 = sst [smem:[#allocation15_spill]] %s1006_s17  ;;  %s34_s20 = sadd.s32 1, %s1002_s16 }
   0xd   : > { %s43_s21 = sadd.s32 1, %s994_s14  ;;  %p36_p0 = scmp.ge.s32.totalorder %s34_s20, 2 }
   0xe   : > { %p50_p1 = scmp.ne.s32.totalorder %s994_s14, %s990_s13  ;;  %p51_p2 = scmp.eq.s32.totalorder %s1006_s17, 0 }
   0xf   : > { %p56_p3 = scmp.ne.s32.totalorder %s990_s13, %s986_s12  ;;  %s1415_s20 = smov (%p36_p0, %s34_s20), 0 }
  0x10   : > { %1380 = sst [smem:[#allocation16_spill]] %s1415_s20  ;;  %p1076_p4 = por %p51_p2, %p50_p1 }
  0x11   : > { %p57_p5 = scmp.eq.s32.totalorder %s1064_s18, 0  ;;  %s38_s23 = ssub.s32 %s1002_s16, %s1415_s20 }
  0x12   : > { %p136_p6 = scmp.eq.s32.totalorder %s1064_s18, 1  ;;  %p41_p7 = scmp.eq.s32.totalorder %s38_s23, 0 }
  0x13   : > { %p1084_p8 = por %p57_p5, %p56_p3  ;;  %p142_p10 = scmp.eq.s32.totalorder %s692_s19, 1 }
  0x14   : > { %p1088_p9 = por %p136_p6, %p50_p1  ;;  %p694_p12 = scmp.ge.s32.totalorder %s1006_s17, 2 }
  0x15   : > { %s1093_s26 = scalar_select %p41_p7, %s994_s14, %s43_s21  }
  0x16   : > { %s1383_s25 = scalar_select %p1088_p9, 1, 0 }
  0x17   : > { %1385 = sst [smem:[#allocation18_spill]] %s1093_s26  ;;  %p1095_p11 = por %p142_p10, %p56_p3 }
  0x18   : > { %1384 = sst [smem:[#allocation17_spill]] %s1383_s25  ;;  %p743_p13 = scmp.lt.s32.totalorder %s1006_s17, 2 }
  0x19   : > { %s1386_s27 = scalar_select %p1095_p11, 1, 0 }
  0x1a   : > { %s1102_s28 = sand.u32 1, %s994_s14   ;;  %s718_s30 = sshll.u32 %s1002_s16, 5 }
  0x1b   : > { %1387 = sst [smem:[#allocation19_spill]] %s1386_s27  ;;  %s695_s29 = sshll.u32 %s1102_s28, 5 }
  0x1c   : > { %p1108_p0 = pnand %p743_p13, %p1076_p4  ;;  %s186_s5 = sand.u32 1, %s1006_s17  }
  0x1d   : > { %s1389_s1 = sld [smem:[#allocation20_spill]]  ;;  %s190_s10 = scalar_lea.vmem [#allocation6], %s695_s29 }
  0x1e   : > { %s200_s11 = sshll.u32 %s190_s10, 4  ;;  %s187_s19 = scalar_lea.sflag [#allocation7], %s186_s5  ;;  %s201_s11 = int_to_ptr.vmem [resolvable:$true] %s200_s11 }
  0x1f   : > { %s1008_s21 = smov 128   ;;  %s1009_s22 = smov 8  }
  0x20   : > { %p703_p1 = scmp.ge.s32.totalorder %s1006_s17, 1  ;;  %p228_p2 = scmp.lt.s32.totalorder %s1006_s17, 3 }
  0x21   : > { %s163_s5 = scalar_lea.sflag [#allocation4], %s1102_s28 }
  0x22   : > { %p1120_p3 = pnand %p703_p1, %p228_p2 }
  0x23   : > { %s197_s8 = scalar_lea.hbm %s1389_s1, %s718_s30  ;;  %s166_s1 = scalar_lea.vmem [#allocation3], %s695_s29 }
  0x24   : > { %s198_s9 = sshll.u32 %s197_s8, 4  ;;  %s173_s8 = scalar_lea.hbm %s1364_s0, %s718_s30  ;;  %s199_s9 = int_to_ptr.hbm [resolvable:$true] %s198_s9 }
  0x25   : > { %735 = dma.hbm_to_vmem [thread:$0]  (!%p1108_p0), %s199_s9, 512, %s201_s11, %s187_s19, %s1008_s21, %s1008_s21, %s1009_s22  }
  0x26   : > { %s174_s10 = sshll.u32 %s173_s8, 4  ;;  %s176_s20 = sshll.u32 %s166_s1, 4  ;;  %s175_s10 = int_to_ptr.hbm [resolvable:$true] %s174_s10  ;;  %s177_s20 = int_to_ptr.vmem [resolvable:$true] %s176_s20 }
  0x27   : > { %732 = dma.hbm_to_vmem [thread:$0]  (!%p1108_p0), %s175_s10, 512, %s177_s20, %s163_s5, %s1008_s21, %s1008_s21, %s1009_s22  }
  0x28   : > { %s701_s9 = sshll.u32 %s1102_s28, 3  ;;  %s702_s11 = sshll.u32 %s1002_s16, 3 }
  0x29   : > { %s219_s17 = scalar_lea.hbm %s1366_s2, %s702_s11  ;;  %s214_s12 = scalar_lea.vmem [#allocation8], %s701_s9 }
  0x2a   : > { %s221_s27 = sshll.u32 %s219_s17, 4  ;;  %s223_s25 = sshll.u32 %s214_s12, 4  ;;  %s222_s27 = int_to_ptr.hbm [resolvable:$true] %s221_s27  ;;  %s224_s25 = int_to_ptr.vmem [resolvable:$true] %s223_s25 }
  0x2b   : > { %738 = dma.hbm_to_vmem [thread:$0]  (!%p1108_p0), %s222_s27, 128, %s224_s25, %s187_s19  }
  0x2c   : > { %232 = sbr.rel (%p1120_p3) target bundleno = 115 (0x73), region = 32  ;;  %s1140_s1 = sand.u32 (!%p1120_p3), 1, %s990_s13  }
  0x2d   : > { %s1143_s20 = sshll.u32 (!%p1120_p3), %s1140_s1, 5  ;;  %s235_s14 = scalar_lea.sflag (!%p1120_p3), [#allocation4], %s1140_s1 }
  0x2e   : > { %s238_s17 = scalar_lea.vmem (!%p1120_p3), [#allocation3], %s1143_s20 }
  0x31   : > { %973 = dma.done.wait (%p1084_p8), %s235_s14, 512  }
  0x32   : > { %975 = vsyncadd (%p1084_p8), %s235_s14, 4294966784  ;;  %s244_s12 = sand.u32 1, %s1064_s18   ;;  %s1153_s26 = scalar_lea.vmem [#allocation6], %s1143_s20 }
  0x33   : > { %s245_s25 = scalar_lea.sflag [#allocation7], %s244_s12 }
  0x34   : > { %977 = dma.done.wait (%p1084_p8), %s245_s25, 640  }
  0x35   : > { %979 = vsyncadd (%p1084_p8), %s245_s25, 4294966656  ;;  %v327_v0 = vlaneseq  ;;  %s708_s27 = sshll.u32 %s998_s15, 5  ;;  %s706_s28 = sshll.u32 %s1140_s1, 3  ;;  %v302_v12 = vld [vmem:[%s238_s17] sm:$0xff]  ;;  %v303_v13 = vld [vmem:[%s238_s17 + $0x8] sm:$0xff] }
  0x36   : > { %v337_v1 = vstv %s708_s27  ;;  %v304_v14 = vld [vmem:[%s238_s17 + $0x10] sm:$0xff]  ;;  %v305_v15 = vld [vmem:[%s238_s17 + $0x18] sm:$0xff]  ;;  %v1163_v16 = vmul.f32 10.0, %v302_v12  ;;  %v1165_v17 = vmul.f32 10.0, %v303_v13  ;;  %s258_s18 = scalar_lea.vmem [#allocation8], %s706_s28  ;;  %v310_v45 = vld [vmem:[%s1153_s26] sm:$0xff]  ;;  %s556_s4 = scalar_lea.hbm %s1367_s3, %s708_s27 }
  0x37   : > { %v328_v2 = vshrl.u32 %v327_v0, 7  ;;  %v333_v7 = vand.u32 127, %v327_v0  ;;  %v1167_v18 = vmul.f32 10.0, %v304_v14  ;;  %v1169_v20 = vmul.f32 10.0, %v305_v15  ;;  %v318_v24 = vld [vmem:[%s258_s18] sm:$0xff]  ;;  %v312_v55 = vld [vmem:[%s1153_s26 + $0x10] sm:$0xff] }
  0x38   : > { %v358_v28 = vand.u32 2147483647, %v1163_v16  ;;  %v359_v29 = vand.u32 2147483647, %v1165_v17  ;;  %v319_v30 = vunpack.c.0.s8 %v318_v24  ;;  %v320_v35 = vunpack.c.1.s8 %v318_v24  ;;  %v311_v52 = vld [vmem:[%s1153_s26 + $0x8] sm:$0xff]  ;;  %v313_v59 = vld [vmem:[%s1153_s26 + $0x18] sm:$0xff] }
  0x39   : > { %v329_v3 = vadd.s32 8, %v328_v2  ;;  %v330_v4 = vadd.s32 16, %v328_v2  ;;  %v331_v5 = vadd.s32 24, %v328_v2  ;;  %v338_v6 = vadd.s32 %v337_v1, %v328_v2  ;;  %s1231_s24 = scalar_lea.vmem [#allocation9], %s1143_s20  ;;  %s559_s21 = sshll.u32 %s556_s4, 4  ;;  %s560_s21 = int_to_ptr.hbm [resolvable:$true] %s559_s21 }
  0x3a   : > { %v360_v31 = vand.u32 2147483647, %v1167_v18  ;;  %v361_v32 = vand.u32 2147483647, %v1169_v20  ;;  %v362_v33 = vsub.f32 0.0, %v358_v28  ;;  %v363_v34 = vsub.f32 0.0, %v359_v29 }
  0x3b   : > { %v339_v8 = vadd.s32 %v337_v1, %v329_v3  ;;  %v340_v9 = vadd.s32 %v337_v1, %v330_v4  ;;  %v341_v10 = vadd.s32 %v337_v1, %v331_v5  ;;  %v342_v11 = vmul.u32 128, %v338_v6  ;;  %s557_s19 = sshll.u32 %s1231_s24, 4  ;;  %s545_s22 = scalar_lea.sflag [#allocation5], %s1140_s1  ;;  %s558_s19 = int_to_ptr.vmem [resolvable:$true] %s557_s19 }
  0x3c   : > { %v321_v36 = vunpack.c.2.s8 %v318_v24  ;;  %v364_v37 = vsub.f32 0.0, %v360_v31  ;;  %v365_v38 = vsub.f32 0.0, %v361_v32  ;;  %v322_v39 = vunpack.c.3.s8 %v318_v24  ;;  %s934_s23 = sshra.s32 %s560_s21, 4  ;;  %s940_s10 = scalar_lea.hbm %s1367_s3, 64  ;;  %s935_s23 = int_to_ptr.hbm [resolvable:$true] %s934_s23 }
  0x3d   : > { %v343_v19 = vmul.u32 128, %v339_v8  ;;  %v344_v21 = vmul.u32 128, %v340_v9  ;;  %v345_v22 = vmul.u32 128, %v341_v10  ;;  %v1171_v23 = vadd.s32 %v342_v11, %v333_v7  ;;  %s936_s6 = scalar_lea.hbm %s935_s23, 32  ;;  %p941_p7 = scmp.lt.s32.totalorder %s935_s23, %s1367_s3 }
  0x3e   : > { %v1186_v40 = vcvt.s32.f32 %v319_v30  ;;  %v366_v41 = vmul.f32 1.442695, %v362_v33  ;;  %v368_v42 = vmul.f32 1.442695, %v363_v34  ;;  %v1188_v43 = vcvt.s32.f32 %v320_v35  ;;  %p937_p4 = scmp.ne.s32.totalorder %s935_s23, %s936_s6  ;;  %p942_p8 = scmp.lt.s32.totalorder %s940_s10, %s936_s6 }
  0x3f   : > { %v1173_v25 = vadd.s32 %v343_v19, %v333_v7  ;;  %v1175_v26 = vadd.s32 %v344_v21, %v333_v7  ;;  %v1177_v27 = vadd.s32 %v345_v22, %v333_v7  ;;  %vm350_vm0 = vcmp.lt.s32.totalorder %v1171_v23, 128 }
  0x40   : > { %v1190_v44 = vcvt.s32.f32 %v321_v36  ;;  %v370_v46 = vmul.f32 1.442695, %v364_v37  ;;  %v372_v47 = vmul.f32 1.442695, %v365_v38  ;;  %v1193_v48 = vcvt.s32.f32 %v322_v39  ;;  %p938_p5 = pnand %p937_p4, %p1088_p9  ;;  %p943_p10 = por %p942_p8, %p941_p7 }
  0x41   : > { %vm351_vm1 = vcmp.lt.s32.totalorder %v1173_v25, 128  ;;  %vm352_vm2 = vcmp.lt.s32.totalorder %v1175_v26, 128  ;;  %v498_v49 = vmul.f32 %v1186_v40, %v1163_v16  ;;  %vm353_vm3 = vcmp.lt.s32.totalorder %v1177_v27, 128 }
  0x42   : > { %798 = vpow2.f32 %v366_v41  ;;  %v499_v50 = vmul.f32 %v1188_v43, %v1165_v17  ;;  %v500_v51 = vmul.f32 %v1190_v44, %v1167_v18  ;;  %v501_v53 = vmul.f32 %v1193_v48, %v1169_v20  ;;  %p939_p6 = pneg %p938_p5 }
  0x43   : > { %800 = vpow2.f32 %v368_v42  ;;  %v502_v54 = vsel %vm350_vm0, %v498_v49, 0.0  ;;  %v1208_v56 = vmul.f32 10.0, %v310_v45  ;;  %v1215_v61 = vmul.f32 10.0, %v311_v52 }
  0x44   : > { %802 = vpow2.f32 %v370_v46  ;;  %v503_v57 = vsel %vm351_vm1, %v499_v50, 0.0  ;;  %v504_v58 = vsel %vm352_vm2, %v500_v51, 0.0  ;;  %v505_v62 = vsel %vm353_vm3, %v501_v53, 0.0  ;;  %p944_p13 = pnand %p943_p10, %p939_p6 }
  0x45   : > { %804 = vpow2.f32 %v372_v47  ;;  %v506_v60 = vadd.f32 %v503_v57, %v502_v54  ;;  %v1219_v63 = vmul.f32 10.0, %v312_v55  ;;  %v1221_v1 = vmul.f32 10.0, %v313_v59 }
  0x46   : > { %v418_v2 = vand.u32 2147483647, %v1208_v56  ;;  %v354_v4 = vmax.f32 %v1163_v16, 0.0  ;;  %v355_v5 = vmax.f32 %v1165_v17, 0.0  ;;  %v356_v6 = vmax.f32 %v1167_v18, 0.0 }
  0x47   : > { %v507_v0 = vadd.f32 %v506_v60, %v504_v58  ;;  %v419_v11 = vand.u32 2147483647, %v1215_v61  ;;  %v357_v13 = vmax.f32 %v1169_v20, 0.0  ;;  %v420_v19 = vand.u32 2147483647, %v1219_v63 }
  0x48   : > { %v799_v3 = vpop.eup %798  ;;  %v421_v24 = vand.u32 2147483647, %v1221_v1  ;;  %v422_v28 = vsub.f32 0.0, %v418_v2  ;;  %vm474_vm4 = vcmp.ne.f32.partialorder %v1186_v40, 1.0  ;;  %vm475_vm5 = vcmp.ne.f32.partialorder %v1188_v43, 1.0 }
  0x49   : > { %v801_v7 = vpop.eup %800  ;;  %v374_v8 = vadd.f32 1.0, %v799_v3  ;;  %v377_v9 = vmul.f32 -0.5, %v799_v3  ;;  %v508_v10 = vadd.f32 %v507_v0, %v505_v62  ;;  %v380_v30 = vand.u32 2147483647, %v799_v3 }
  0x4a   : > { %v803_v12 = vpop.eup %802  ;;  %v383_v14 = vadd.f32 1.0, %v801_v7  ;;  %v386_v15 = vmul.f32 -0.5, %v801_v7  ;;  %v423_v34 = vsub.f32 0.0, %v419_v11  ;;  %v389_v35 = vand.u32 2147483647, %v801_v7 }
  0x4b   : > { %v805_v21 = vpop.eup %804  ;;  %806 = vlog2.f32 %v374_v8  ;;  %v392_v22 = vadd.f32 1.0, %v803_v12  ;;  %541 = vst [vmem:[%s1231_s24 + $0x8] sm:$0xff] %v508_v10  ;;  %v378_v29 = vadd.f32 1.0, %v377_v9  ;;  %v395_v31 = vmul.f32 -0.5, %v803_v12 }
  0x4c   : > { %808 = vlog2.f32 %v383_v14  ;;  %v387_v32 = vadd.f32 1.0, %v386_v15  ;;  %v401_v33 = vadd.f32 1.0, %v805_v21  ;;  %v398_v37 = vand.u32 2147483647, %v803_v12 }
  0x4d   : > { %810 = vlog2.f32 %v392_v22  ;;  %v396_v36 = vadd.f32 1.0, %v395_v31  ;;  %v404_v38 = vmul.f32 -0.5, %v805_v21  ;;  %v407_v39 = vand.u32 2147483647, %v805_v21 }
  0x4e   : > { %812 = vlog2.f32 %v401_v33  ;;  %v424_v41 = vsub.f32 0.0, %v420_v19  ;;  %v425_v42 = vsub.f32 0.0, %v421_v24  ;;  %v379_v45 = vmul.f32 %v799_v3, %v378_v29 }
  0x4f   : > { %vm1237_vm6 = vcmp.lt.f32.partialorder %v380_v30, 0.0004427343  ;;  %v405_v47 = vadd.f32 1.0, %v404_v38  ;;  %v426_v49 = vmul.f32 1.442695, %v422_v28  ;;  %v388_v51 = vmul.f32 %v801_v7, %v387_v32 }
  0x50   : > { %v428_v52 = vmul.f32 1.442695, %v423_v34  ;;  %v430_v53 = vmul.f32 1.442695, %v424_v41  ;;  %v432_v54 = vmul.f32 1.442695, %v425_v42  ;;  %v397_v59 = vmul.f32 %v803_v12, %v396_v36 }
  0x51   : > { %v807_v50 = vpop.eup %806  ;;  %vm1241_vm7 = vcmp.lt.f32.partialorder %v389_v35, 0.0004427343  ;;  %814 = vpow2.f32 %v426_v49  ;;  %vm399_vm8 = vcmp.lt.f32.partialorder %v398_v37, 0.0004427343  ;;  %vm1245_vm9 = vcmp.lt.f32.partialorder %v407_v39, 0.0004427343 }
  0x52   : > { %v809_v55 = vpop.eup %808  ;;  %v376_v57 = vmul.f32 0.6931472, %v807_v50  ;;  %816 = vpow2.f32 %v428_v52  ;;  %v406_v7 = vmul.f32 %v805_v21, %v405_v47  ;;  %v414_v15 = vmax.f32 %v1208_v56, 0.0 }
  0x53   : > { %v811_v60 = vpop.eup %810  ;;  %v385_v62 = vmul.f32 0.6931472, %v809_v55  ;;  %818 = vpow2.f32 %v430_v53  ;;  %vm476_vm10 = vcmp.ne.f32.partialorder %v1190_v44, 1.0  ;;  %vm477_vm11 = vcmp.ne.f32.partialorder %v1193_v48, 1.0 }
  0x54   : > { %v382_v2 = vsel %vm1237_vm6, %v379_v45, %v376_v57  ;;  %v394_v3 = vmul.f32 0.6931472, %v811_v60  ;;  %v813_v8 = vpop.eup %812  ;;  %820 = vpow2.f32 %v432_v54  ;;  %v415_v45 = vmax.f32 %v1215_v61, 0.0 }
  0x55   : > { %v391_v9 = vsel %vm1241_vm7, %v388_v51, %v385_v62  ;;  %v410_v10 = vadd.f32 %v382_v2, %v354_v4  ;;  %v403_v12 = vmul.f32 0.6931472, %v813_v8  ;;  %v416_v8 = vmax.f32 %v1219_v63, 0.0 }
  0x56   : > { %v400_v11 = vsel %vm399_vm8, %v397_v59, %v394_v3  ;;  %v411_v14 = vadd.f32 %v391_v9, %v355_v5  ;;  %v1010_v5 = vmov 0.0   ;;  %v417_v63 = vmax.f32 %v1221_v1, 0.0 }
  0x57   : > { %v412_v19 = vadd.f32 %v400_v11, %v356_v6  ;;  %v487_v21 = vsel %vm350_vm0, %v410_v10, 0.0  ;;  %v815_v16 = vpop.eup %814  ;;  %v409_v4 = vsel %vm1245_vm9, %v406_v7, %v403_v12  ;;  %v709_v22 = vsel %vm474_vm4, 1.0, %v1010_v5 }
  0x58   : > { %v488_v17 = vsel %vm351_vm1, %v411_v14, 0.0  ;;  %v710_v18 = vsel %vm475_vm5, 1.0, %v1010_v5  ;;  %v817_v6 = vpop.eup %816  ;;  %v413_v24 = vadd.f32 %v409_v4, %v357_v13  ;;  %v434_v30 = vadd.f32 1.0, %v815_v16 }
  0x59   : > { %v489_v28 = vsel %vm352_vm2, %v412_v19, 0.0  ;;  %v491_v29 = vadd.f32 %v488_v17, %v487_v21  ;;  %v819_v31 = vpop.eup %818  ;;  %v437_v32 = vmul.f32 -0.5, %v815_v16  ;;  %v443_v33 = vadd.f32 1.0, %v817_v6 }
  0x5a   : > { %v446_v34 = vmul.f32 -0.5, %v817_v6  ;;  %v711_v40 = vsel %vm476_vm10, 1.0, %v1010_v5  ;;  %v821_v35 = vpop.eup %820  ;;  %v490_v43 = vsel %vm353_vm3, %v413_v24, 0.0  ;;  %822 = vlog2.f32 %v434_v30 }
  0x5b   : > { %v492_v36 = vadd.f32 %v491_v29, %v489_v28  ;;  %v440_v20 = vand.u32 2147483647, %v815_v16  ;;  %v438_v13 = vadd.f32 1.0, %v437_v32  ;;  %824 = vlog2.f32 %v443_v33 }
  0x5c   : > { %v524_v37 = vsel %vm350_vm0, %v709_v22, 0.0  ;;  %v525_v38 = vsel %vm351_vm1, %v710_v18, 0.0  ;;  %v447_v41 = vadd.f32 1.0, %v446_v34  ;;  %v452_v44 = vadd.f32 1.0, %v819_v31 }
  0x5d   : > { %v493_v39 = vadd.f32 %v492_v36, %v490_v43  ;;  %v455_v42 = vmul.f32 -0.5, %v819_v31  ;;  %v449_v46 = vand.u32 2147483647, %v817_v6  ;;  %v461_v47 = vadd.f32 1.0, %v821_v35 }
  0x5e   : > { %v712_v49 = vsel %vm477_vm11, 1.0, %v1010_v5  ;;  %vm1288_vm12 = vcmp.lt.f32.partialorder %v440_v20, 0.0004427343  ;;  %826 = vlog2.f32 %v452_v44  ;;  %v464_v51 = vmul.f32 -0.5, %v821_v35 }
  0x5f   : > { %540 = vst [vmem:[%s1231_s24] sm:$0xff] %v493_v39  ;;  %v526_v52 = vsel %vm352_vm2, %v711_v40, 0.0  ;;  %v439_v53 = vmul.f32 %v815_v16, %v438_v13  ;;  %v456_v54 = vadd.f32 1.0, %v455_v42  ;;  %828 = vlog2.f32 %v461_v47 }
  0x60   : > { %v528_v55 = vadd.f32 %v525_v38, %v524_v37  ;;  %v823_v61 = vpop.eup %822  ;;  %v448_v57 = vmul.f32 %v817_v6, %v447_v41  ;;  %v458_v58 = vand.u32 2147483647, %v819_v31  ;;  %v465_v59 = vadd.f32 1.0, %v464_v51 }
  0x61   : > { %v527_v48 = vsel %vm353_vm3, %v712_v49, 0.0  ;;  %v825_v60 = vpop.eup %824  ;;  %v436_v62 = vmul.f32 0.6931472, %v823_v61  ;;  %vm1296_vm13 = vcmp.lt.f32.partialorder %v449_v46, 0.0004427343  ;;  %v457_v10 = vmul.f32 %v819_v31, %v456_v54 }
  0x62   : > { %v467_v2 = vand.u32 2147483647, %v821_v35  ;;  %v529_v3 = vadd.f32 %v528_v55, %v526_v52  ;;  %v445_v7 = vmul.f32 0.6931472, %v825_v60  ;;  %vm1305_vm14 = vcmp.lt.f32.partialorder %v458_v58, 0.0004427343 }
  0x63   : > { %v442_v9 = vsel %vm1288_vm12, %v439_v53, %v436_v62  ;;  %v466_v21 = vmul.f32 %v821_v35, %v465_v59 }
  0x64   : > { %v530_v11 = vadd.f32 %v529_v3, %v527_v48  ;;  %v827_v12 = vpop.eup %826  ;;  %v451_v14 = vsel %vm1296_vm13, %v448_v57, %v445_v7  ;;  %v470_v16 = vadd.f32 %v442_v9, %v414_v15  ;;  %vm468_vm15 = vcmp.lt.f32.partialorder %v467_v2, 0.0004427343 }
  0x65   : > { %v829_v4 = vpop.eup %828  ;;  %v454_v17 = vmul.f32 0.6931472, %v827_v12  ;;  %v471_v5 = vadd.f32 %v451_v14, %v415_v45 }
  0x66   : > { %543 = vst [vmem:[%s1231_s24 + $0x18] sm:$0xff] %v530_v11  ;;  %v463_v22 = vmul.f32 0.6931472, %v829_v4  ;;  %v513_v18 = vsel %vm350_vm0, %v470_v16, 0.0 }
  0x67   : > { %v460_v56 = vsel %vm1305_vm14, %v457_v10, %v454_v17  ;;  %v514_v1 = vsel %vm351_vm1, %v471_v5, 0.0 }
  0x68   : > { %v469_v15 = vsel %vm468_vm15, %v466_v21, %v463_v22  ;;  %v472_v6 = vadd.f32 %v460_v56, %v416_v8  ;;  %v517_v24 = vadd.f32 %v514_v1, %v513_v18 }
  0x69   : > { %v473_v28 = vadd.f32 %v469_v15, %v417_v63 }
  0x6a   : > { %v515_v29 = vsel %vm352_vm2, %v472_v6, 0.0 }
  0x6b   : > { %v516_v23 = vsel %vm353_vm3, %v473_v28, 0.0  ;;  %v518_v30 = vadd.f32 %v517_v24, %v515_v29 }
  0x6d   : > { %v519_v31 = vadd.f32 %v518_v30, %v516_v23 }
  0x6f   : > { %542 = vst [vmem:[%s1231_s24 + $0x10] sm:$0xff] %v519_v31 }
  0x70   : > { %947 = shalt.err (!%p944_p13)
}
  0x71   : > { %s1011_s11 = smov 128   ;;  %s1012_s1 = smov 8  }
  0x72   : > { %727 = dma.vmem_to_hbm [thread:$0]  (%p1088_p9), %s558_s19, 512, %s560_s21, %s545_s22, %s1011_s11, %s1011_s11, %s1012_s1  }
  0x73 PF: > { %s1404_s20 = sld [smem:[#allocation13_spill]]  ;;  %p740_p0 = pnand %p694_p12, %p1095_p11 }
  0x74   : > { %s1406_s17 = sld [smem:[#allocation15_spill]] }
  0x75   : > { %p741_p1 = pneg %p740_p0 }
  0x79   : > { %s574_s12 = sand.u32 1, %s1404_s20  }
  0x7a   : > { %s575_s25 = scalar_lea.sflag [#allocation5], %s574_s12 }
  0x7b   : > { %981 = dma.done.wait (%p741_p1), %s575_s25, 512  }
  0x7c   : > { %983 = vsyncadd (%p741_p1), %s575_s25, 4294966784  ;;  %s22_s17 = sadd.s32 1, %s1406_s17   ;;  %s1407_s26 = sld [smem:[#allocation14_spill]] }
  0x7d   : > { %p19_p2 = scmp.ge.s32.totalorder %s22_s17, 4   ;;  %s1408_s14 = sld [smem:[#allocation18_spill]] }
  0x7e   : > { %s1409_s27 = sld [smem:[#allocation16_spill]]  ;;  %s1410_s12 = smov %s990_s13 }
  0x7f   : > { %s1412_s15 = smov %s1002_s16 }
  0x80   :  { %21 = sbr.rel (!%p19_p2) target bundleno = 10 (0xa), region = 112 }
  0x82   : > { %s1411_s13 = smov %s1407_s26 }
  0x84   : > { %s1413_s16 = smov %s1409_s27 }
  0x85   :  { %581 = vsyncpa [#allocation4], 1 }
  0x86   :  { %583 = vsyncpa [#allocation4 + $0x1], 1 }
  0x87   :  { %584 = vsyncpa [#allocation7], 1 }
  0x88   :  { %586 = vsyncpa [#allocation7 + $0x1], 1 }
  0x89   :  { %587 = vsyncpa [#allocation5], 1 }
  0x8a   :  { %589 = vsyncpa [#allocation5 + $0x1], 1 }

</bundles_post_ra>
